<compile_context>
chip_gen: v5e
topology: v5e:2x2
jax: 0.10.0
libtpu: 0.0.40
codegen_flags: <defaults>
</compile_context>

<pallas_src>
import jax
import jax.numpy as jnp
from jax.experimental import pallas as pl
from jax.experimental.pallas import tpu as pltpu

EPS = 1e-5
_TARGET_BLOCK_BYTES = 4 << 20   # ~4 MiB per x block (in + out double-buffered ~16 MiB)


def _round_up(x, m):
    return -(-x // m) * m


def _choose_block_rows(rows, size_padded, itemsize):
    """Largest row block (multiple of 8) targeting ~4 MiB of VMEM per block,
    capped so the grid has >= 2 steps when rows allow it (v7x megacore) and
    never much larger than the row count."""
    br = _TARGET_BLOCK_BYTES // (size_padded * itemsize)
    br = max(8, (br // 8) * 8)
    if rows > 8:
        half = _round_up(-(-rows // 2), 8)   # ceil(rows/2) rounded up to 8
        br = min(br, half)
    br = min(br, _round_up(rows, 8))
    return br


def _layernorm_kernel(x_ref, gamma_ref, beta_ref, o_ref):
    # x_ref: (block_rows, size); gamma/beta: (1, size).  No lane mask needed:
    # the block's last dim is the exact normalization size.
    x = x_ref[...].astype(jnp.float32)
    inv_n = 1.0 / float(x.shape[-1])

    mean = jnp.sum(x, axis=-1, keepdims=True) * inv_n
    xc = x - mean
    var = jnp.sum(xc * xc, axis=-1, keepdims=True) * inv_n
    inv = jax.lax.rsqrt(var + EPS)

    y = xc * inv * gamma_ref[...].astype(jnp.float32) + beta_ref[...].astype(jnp.float32)
    o_ref[...] = y.astype(o_ref.dtype)


def layernorm_2d(x2d, gamma, beta):
    """x2d: (rows, size); gamma/beta: (size,). Row-wise LayerNorm over last dim."""
    rows, size = x2d.shape
    itemsize = jnp.dtype(x2d.dtype).itemsize

    # Budget VMEM with the lane-padded width the tile will actually occupy.
    size_vmem = _round_up(size, 128)
    block_rows = _choose_block_rows(rows, size_vmem, itemsize)
    grid = (pl.cdiv(rows, block_rows),)

    gamma2 = gamma.reshape(1, size)
    beta2 = beta.reshape(1, size)

    # x block double-buffered in + out (~4x block bytes) plus params/headroom.
    block_bytes = block_rows * size_vmem * itemsize
    vmem_limit = max(32 << 20, min(4 * block_bytes + (2 << 20), 120 << 20))

    out = pl.pallas_call(
        _layernorm_kernel,
        out_shape=jax.ShapeDtypeStruct((rows, size), x2d.dtype),
        grid_spec=pltpu.PrefetchScalarGridSpec(
            num_scalar_prefetch=0,
            grid=grid,
            in_specs=[
                pl.BlockSpec((block_rows, size), lambda i: (i, 0)),
                pl.BlockSpec((1, size), lambda i: (0, 0)),
                pl.BlockSpec((1, size), lambda i: (0, 0)),
            ],
            out_specs=pl.BlockSpec((block_rows, size), lambda i: (i, 0)),
        ),
        compiler_params=pltpu.CompilerParams(
            dimension_semantics=("parallel",),
            vmem_limit_bytes=vmem_limit,
        ),
    )(x2d, gamma2, beta2)
    return out


def batchnorm2d_forward(x, gamma, beta):
    """Mirrors BatchNorm2d.forward: LayerNorm(size=H*W) over flattened spatial dims."""
    # TODO(synk): despite the module name, this is LayerNorm over H*W per (n, c),
    # not true BatchNorm2d (no running stats); this matches the PyTorch reference.
    if x.ndim == 4:
        a, b, c, d = x.shape
        x2d = x.reshape(a * b, c * d)
        y2d = layernorm_2d(x2d, gamma, beta)
        return y2d.reshape(a, b, c, d)
    # non-4D path: normalize over the last dim directly (matches self.norm(x))
    lead = x.shape[:-1]
    size = x.shape[-1]
    y = layernorm_2d(x.reshape(-1, size), gamma, beta)
    return y.reshape(*lead, size)


def _reference(x, gamma, beta):
    a, b, c, d = x.shape
    xf = x.reshape(a, b, c * d).astype(jnp.float32)
    mean = xf.mean(axis=-1, keepdims=True)
    var = ((xf - mean) ** 2).mean(axis=-1, keepdims=True)
    y = (xf - mean) / jnp.sqrt(var + EPS) * gamma + beta
    return y.reshape(a, b, c, d)


if __name__ == "__main__":
    key = jax.random.PRNGKey(0)

    # Case 1: aligned spatial size (H*W = 256, lane-multiple), rows = N*C = 8.
    k1, k2, k3, k4, k5, k6 = jax.random.split(key, 6)
    N, C, H, W = 2, 4, 16, 16
    size = H * W
    x = jax.random.normal(k1, (N, C, H, W), dtype=jnp.float32)
    gamma = 1.0 + 0.1 * jax.random.normal(k2, (size,), dtype=jnp.float32)
    beta = 0.1 * jax.random.normal(k3, (size,), dtype=jnp.float32)

    out = batchnorm2d_forward(x, gamma, beta)
    out = jax.block_until_ready(out)
    ref = _reference(x, gamma, beta)
    assert out.shape == x.shape
    assert jnp.max(jnp.abs(out - ref)) < 1e-4

    # Case 2: unaligned spatial size (H*W = 196) and rows (15) not a multiple of
    # the row block -> exercises the full-width block + OOB boundary-row paths.
    N2, C2, H2, W2 = 3, 5, 14, 14
    size2 = H2 * W2
    x2 = jax.random.normal(k4, (N2, C2, H2, W2), dtype=jnp.float32)
    gamma2 = 1.0 + 0.1 * jax.random.normal(k5, (size2,), dtype=jnp.float32)
    beta2 = 0.1 * jax.random.normal(k6, (size2,), dtype=jnp.float32)

    out2 = batchnorm2d_forward(x2, gamma2, beta2)
    out2 = jax.block_until_ready(out2)
    ref2 = _reference(x2, gamma2, beta2)
    assert out2.shape == x2.shape
    assert jnp.max(jnp.abs(out2 - ref2)) < 1e-4

    print("KERNEL_OK")
</pallas_src>

<mosaic_0001>
module attributes {stable_mosaic.version = 11 : i64} {
  func.func @_layernorm_kernel(%arg0: i32, %arg1: memref<8x256xf32, #tpu.memory_space<vmem>>, %arg2: memref<1x256xf32, #tpu.memory_space<vmem>>, %arg3: memref<1x256xf32, #tpu.memory_space<vmem>>, %arg4: memref<8x256xf32, #tpu.memory_space<vmem>>) attributes {dimension_semantics = [#tpu.dimension_semantics<parallel>], iteration_bounds = array<i64: 1>, scalar_prefetch = 0 : i64, scratch_operands = 0 : i64, tpu.core_type = #tpu.core_type<tc>, window_params = [{transform_indices = @transform_0, window_bounds = array<i64: 8, 256>}, {pipeline_mode = #tpu.pipeline_mode<synchronous>, transform_indices = @transform_1, window_bounds = array<i64: 1, 256>}, {pipeline_mode = #tpu.pipeline_mode<synchronous>, transform_indices = @transform_2, window_bounds = array<i64: 1, 256>}, {transform_indices = @transform_3, window_bounds = array<i64: 8, 256>}]} {
    %c0 = arith.constant 0 : index
    %c0_0 = arith.constant 0 : index
    %0 = vector.load %arg1[%c0, %c0_0] : memref<8x256xf32, #tpu.memory_space<vmem>>, vector<8x256xf32>
    %cst = arith.constant dense<0.000000e+00> : vector<8xf32>
    %1 = vector.multi_reduction <add>, %0, %cst [1] : vector<8x256xf32> to vector<8xf32>
    %2 = vector.shape_cast %1 : vector<8xf32> to vector<8x1xf32>
    %cst_1 = arith.constant 3.906250e-03 : f32
    %3 = vector.broadcast %cst_1 : f32 to vector<8x1xf32>
    %4 = arith.mulf %2, %3 : vector<8x1xf32>
    %5 = vector.broadcast %4 : vector<8x1xf32> to vector<8x256xf32>
    %6 = arith.subf %0, %5 : vector<8x256xf32>
    %7 = arith.mulf %6, %6 : vector<8x256xf32>
    %cst_2 = arith.constant dense<0.000000e+00> : vector<8xf32>
    %8 = vector.multi_reduction <add>, %7, %cst_2 [1] : vector<8x256xf32> to vector<8xf32>
    %9 = vector.shape_cast %8 : vector<8xf32> to vector<8x1xf32>
    %cst_3 = arith.constant 3.906250e-03 : f32
    %10 = vector.broadcast %cst_3 : f32 to vector<8x1xf32>
    %11 = arith.mulf %9, %10 : vector<8x1xf32>
    %cst_4 = arith.constant 9.99999974E-6 : f32
    %12 = vector.broadcast %cst_4 : f32 to vector<8x1xf32>
    %13 = arith.addf %11, %12 : vector<8x1xf32>
    %14 = math.rsqrt %13 : vector<8x1xf32>
    %15 = vector.broadcast %14 : vector<8x1xf32> to vector<8x256xf32>
    %16 = arith.mulf %6, %15 : vector<8x256xf32>
    %c0_5 = arith.constant 0 : index
    %c0_6 = arith.constant 0 : index
    %17 = vector.load %arg2[%c0_5, %c0_6] : memref<1x256xf32, #tpu.memory_space<vmem>>, vector<1x256xf32>
    %18 = vector.broadcast %17 : vector<1x256xf32> to vector<8x256xf32>
    %19 = arith.mulf %16, %18 : vector<8x256xf32>
    %c0_7 = arith.constant 0 : index
    %c0_8 = arith.constant 0 : index
    %20 = vector.load %arg3[%c0_7, %c0_8] : memref<1x256xf32, #tpu.memory_space<vmem>>, vector<1x256xf32>
    %21 = vector.broadcast %20 : vector<1x256xf32> to vector<8x256xf32>
    %22 = arith.addf %19, %21 : vector<8x256xf32>
    %c0_9 = arith.constant 0 : index
    %c0_10 = arith.constant 0 : index
    %23 = vector.load %arg4[%c0_9, %c0_10] : memref<8x256xf32, #tpu.memory_space<vmem>>, vector<8x256xf32>
    tpu.vector_store %arg4[%c0_9, %c0_10], %22 {strides = array<i32>} : memref<8x256xf32, #tpu.memory_space<vmem>>, vector<8x256xf32>,
    return
  }
  func.func @transform_0(%arg0: i32) -> (i32, i32) {
    %c0_i32 = arith.constant 0 : i32
    %c0_i32_0 = arith.constant 0 : i32
    return %arg0, %c0_i32 : i32, i32
  }
  func.func @transform_1(%arg0: i32) -> (i32, i32) {
    %c0_i32 = arith.constant 0 : i32
    %c0_i32_0 = arith.constant 0 : i32
    %c0_i32_1 = arith.constant 0 : i32
    return %c0_i32, %c0_i32_0 : i32, i32
  }
  func.func @transform_2(%arg0: i32) -> (i32, i32) {
    %c0_i32 = arith.constant 0 : i32
    %c0_i32_0 = arith.constant 0 : i32
    %c0_i32_1 = arith.constant 0 : i32
    return %c0_i32, %c0_i32_0 : i32, i32
  }
  func.func @transform_3(%arg0: i32) -> (i32, i32) {
    %c0_i32 = arith.constant 0 : i32
    %c0_i32_0 = arith.constant 0 : i32
    return %arg0, %c0_i32 : i32, i32
  }
}

</mosaic_0001>

<bundles_post_ra>
// kernel: tpu_custom_call.1
= control target key start
LH: loop header
LB: loop body
LE: loop exit
PB: predicated region body
PF: predicated region fallthrough
CT: control target
= control target key end

     0   :  { %8 = vsyncpa [#allocation3], 0  ;;  %s263_s0 = inlined_call_operand.hbm [shape: f32[8,256], index: 0, kind: input, shape index: {}]   ;;  %s264_s1 = inlined_call_operand.hbm [shape: f32[1,256], index: 1, kind: input, shape index: {}]   ;;  %s265_s2 = inlined_call_operand.hbm [shape: f32[1,256], index: 2, kind: input, shape index: {}]   ;;  %s266_s3 = inlined_call_operand.hbm [shape: f32[8,256], index: 3, kind: output, shape index: {}]  }
   0x1   :  { %9 = vsyncpa [#allocation6], 0  ;;  %s27_s14 = sshll.u32 %s264_s1, 4  ;;  %s28_s14 = int_to_ptr.hbm [resolvable:$true] %s27_s14 }
   0x2   :  { %10 = vsyncpa [#allocation4], 0  ;;  %s227_s15 = smov [#allocation5]   ;;  %s16_s19 = sshll.u32 %s263_s0, 4  ;;  %s17_s19 = int_to_ptr.hbm [resolvable:$true] %s16_s19 }
   0x3   :  { %s29_s16 = sshll.u32 %s227_s15, 4  ;;  %s228_s20 = smov [#allocation2]   ;;  %s30_s16 = int_to_ptr.vmem [resolvable:$true] %s29_s16 }
   0x4   :  { %32 = dma.hbm_to_vmem [thread:$0]  %s28_s14, 32, %s30_s16, [#allocation6]  }
   0x5   :  { %s18_s21 = sshll.u32 %s228_s20, 4  ;;  %s38_s24 = sshll.u32 %s265_s2, 4  ;;  %s19_s21 = int_to_ptr.vmem [resolvable:$true] %s18_s21  ;;  %s39_s24 = int_to_ptr.hbm [resolvable:$true] %s38_s24 }
   0x6   :  { %21 = dma.hbm_to_vmem [thread:$0]  %s17_s19, 256, %s19_s21, [#allocation3]  }
   0x7   :  { %s229_s1 = smov [#allocation7]  }
   0x8   :  { %s40_s25 = sshll.u32 %s229_s1, 4  ;;  %s41_s25 = int_to_ptr.vmem [resolvable:$true] %s40_s25 }
   0x9   :  { %43 = dma.hbm_to_vmem [thread:$0]  %s39_s24, 32, %s41_s25, [#allocation6]  }
   0xa   :  { %221 = dma.done.wait [#allocation3], 256  }
   0xb   :  { %222 = vsyncadd [#allocation3], 4294967040 }
   0xc   :  { %223 = dma.done.wait [#allocation6], 64  }
   0xd   :  { %224 = vsyncadd [#allocation6], 4294967232  ;;  %v56_v0 = vld [vmem:[#allocation2] sm:$0xff]  ;;  %v57_v1 = vld [vmem:[#allocation2 + $0x8] sm:$0xff]  ;;  %s230_s0 = smov [#allocation8]   ;;  %s108_s28 = sshll.u32 %s266_s3, 4  ;;  %s109_s28 = int_to_ptr.hbm [resolvable:$true] %s108_s28 }
   0xe   :  { %v58_v2 = vadd.f32 %v57_v1, %v56_v0  ;;  %v83_v18 = vld [vmem:[#allocation5] sm:$0x3]  ;;  %v91_v20 = vld [vmem:[#allocation7] sm:$0x3]  ;;  %s106_s2 = sshll.u32 %s230_s0, 4  ;;  %s107_s2 = int_to_ptr.vmem [resolvable:$true] %s106_s2 }
   0xf   :  { %v85_v21 = vperm.slane %v83_v18, 0  ;;  %v86_v22 = vperm.slane %v83_v18, 1  ;;  %v93_v26 = vperm.slane %v91_v20, 0  ;;  %v94_v27 = vperm.slane %v91_v20, 1 }
  0x10   :  { %59 = vadd.xlane.f32.xlu0 %v58_v2 }
  0x83   :  { %v60_v3 = vpop.xlane.xlu0 %59 }
  0x84   :  { %v61_v4 = vmul.f32 0.00390625, %v60_v3 }
  0x86   :  { %v62_v5 = vsub.f32 %v56_v0, %v61_v4  ;;  %v63_v6 = vsub.f32 %v57_v1, %v61_v4 }
  0x88   :  { %v64_v7 = vmul.f32 %v62_v5, %v62_v5  ;;  %v65_v8 = vmul.f32 %v63_v6, %v63_v6 }
  0x8a   :  { %v66_v9 = vadd.f32 %v65_v8, %v64_v7 }
  0x8c   :  { %67 = vadd.xlane.f32.xlu0 %v66_v9 }
  0xff   :  { %v68_v10 = vpop.xlane.xlu0 %67 }
 0x100   :  { %v69_v11 = vmul.f32 0.00390625, %v68_v10 }
 0x102   :  { %v70_v12 = vadd.f32 1e-05, %v69_v11 }
 0x104   :  { %123 = vrsqrt.f32 %v70_v12  ;;  %vm77_vm1 = vweird.f32 %v70_v12 }
 0x10a   :  { %v124_v13 = vpop.eup %123 }
 0x10b   :  { %v72_v14 = vmul.f32 %v124_v13, %v70_v12  ;;  %vm78_vm0 = vweird.f32 %v124_v13 }
 0x10c   :  { %vm79_vm2 = vmor %vm77_vm1, %vm78_vm0 }
 0x10d   :  { %v73_v15 = vmul.f32 %v124_v13, %v72_v14 }
 0x10f   :  { %v74_v16 = vmul.f32 0.5, %v73_v15 }
 0x111   :  { %v75_v17 = vsub.f32 1.5, %v74_v16 }
 0x113   :  { %v76_v19 = vmul.f32 %v124_v13, %v75_v17 }
 0x115   :  { %v80_v23 = vsel %vm79_vm2, %v124_v13, %v76_v19 }
 0x116   :  { %v81_v24 = vmul.f32 %v80_v23, %v62_v5  ;;  %v82_v25 = vmul.f32 %v80_v23, %v63_v6 }
 0x118   :  { %v89_v28 = vmul.f32 %v85_v21, %v81_v24  ;;  %v90_v29 = vmul.f32 %v86_v22, %v82_v25 }
 0x11a   :  { %v97_v30 = vadd.f32 %v93_v26, %v89_v28  ;;  %v98_v31 = vadd.f32 %v94_v27, %v90_v29 }
 0x11c   :  { %99 = vst [vmem:[#allocation8] sm:$0xff] %v97_v30 }
 0x11d   :  { %100 = vst [vmem:[#allocation8 + $0x8] sm:$0xff] %v98_v31 }
 0x11e   :  { %111 = dma.vmem_to_hbm [thread:$0]  %s107_s2, 256, %s109_s28, [#allocation4]  }
 0x11f   :  { %225 = dma.done.wait [#allocation4], 256  }
 0x120   :  { %226 = vsyncadd [#allocation4], 4294967040 }
 0x121   :  { %116 = vsyncpa [#allocation3], 1 }
 0x122   :  { %117 = vsyncpa [#allocation6], 1 }
 0x123   :  { %118 = vsyncpa [#allocation4], 1 }

</bundles_post_ra>
